<compile_context>
chip_gen: v7x
topology: tpu7x:2x2x1
jax: 0.10.0
libtpu: 0.0.40
codegen_flags: <defaults>
</compile_context>

<pallas_src>
import jax
import jax.numpy as jnp
from jax import lax
from jax.experimental import pallas as pl
from jax.experimental.pallas import tpu as pltpu


def _itm_kernel(x0_ref, wp_ref, bp_ref, wc_ref, bc_ref, out_ref):
    """x0_ref: [tb, H] bf16 CLS activations
       wp_ref: [H, H]  bf16 pooler weight (nn.Linear layout: y = x @ Wp^T)
       bp_ref: [1, H]  f32 pooler bias
       wc_ref: [2, H]  f32 cls weight (nn.Linear layout)
       bc_ref: [1, 2]  f32 cls bias
       out_ref:[tb, 2] f32 ITM logits
    """
    # BertPooler: tanh(x0 @ Wp^T + bp).  Contract on Wp's LAST axis so no
    # materialized transpose of the HxH weight is ever emitted.
    pooled = jnp.tanh(
        lax.dot_general(
            x0_ref[...], wp_ref[...],
            dimension_numbers=(((1,), (1,)), ((), ())),
            preferred_element_type=jnp.float32,
        )
        + bp_ref[...]
    )  # [tb, H] f32

    # is_match_cls: pooled @ Wc^T + bc  (Wc is tiny: keep f32, no precision loss)
    logits = (
        lax.dot_general(
            pooled, wc_ref[...],
            dimension_numbers=(((1,), (1,)), ((), ())),
            preferred_element_type=jnp.float32,
        )
        + bc_ref[...]
    )  # [tb, 2] f32

    out_ref[...] = logits.astype(out_ref.dtype)


def _pick_batch_tile(B):
    # Multiple of 8 (unmasked sublane stores) when possible; >1 grid step for
    # large B so v7x's two TensorCores both get work.  Small / odd batches run
    # as a single full-array block.
    if B % 8 != 0 or B <= 8:
        return B
    return 8


def bert_is_matched_predictor(hidden_states, pooler_w, pooler_b, cls_w, cls_b):
    """hidden_states: [B, S, H] (or list thereof); pooler_w: [H, H];
    pooler_b: [H]; cls_w: [2, H]; cls_b: [2].  Returns {"ITM_LOGITS": [B, 2]}."""
    if isinstance(hidden_states, list):
        hidden_states = hidden_states[-1]
    B, S, H = hidden_states.shape

    # Only the CLS token feeds the pooler: slice it out before pallas_call so
    # the kernel's HBM traffic is dominated by the Wp read, not the activations.
    # bf16 halves that Wp traffic; f32 accumulation happens on the MXU.
    # (In production, cast Wp to bf16 once at model-load time, not per call.)
    x0 = hidden_states[:, 0, :].astype(jnp.bfloat16)      # [B, H]
    wp = pooler_w.astype(jnp.bfloat16)                    # [H, H]
    bp = pooler_b.astype(jnp.float32).reshape(1, H)       # [1, H]
    wc = cls_w.astype(jnp.float32)                        # [2, H]
    bc = cls_b.astype(jnp.float32).reshape(1, 2)          # [1, 2]

    tb = _pick_batch_tile(B)
    grid = (B // tb,)

    out = pl.pallas_call(
        _itm_kernel,
        out_shape=jax.ShapeDtypeStruct((B, 2), jnp.float32),
        grid=grid,
        in_specs=[
            pl.BlockSpec((tb, H), lambda i: (i, 0)),   # CLS activations, per-tile
            pl.BlockSpec((H, H), lambda i: (0, 0)),    # Wp, resident across grid
            pl.BlockSpec((1, H), lambda i: (0, 0)),    # bp
            pl.BlockSpec((2, H), lambda i: (0, 0)),    # Wc
            pl.BlockSpec((1, 2), lambda i: (0, 0)),    # bc
        ],
        out_specs=pl.BlockSpec((tb, 2), lambda i: (i, 0)),
        compiler_params=pltpu.CompilerParams(
            dimension_semantics=("parallel",)
        ),
    )(x0, wp, bp, wc, bc)
    return {"ITM_LOGITS": out}


def _reference_f32(hidden_states, pooler_w, pooler_b, cls_w, cls_b):
    x0 = hidden_states[:, 0, :]
    pooled = jnp.tanh(x0 @ pooler_w.T + pooler_b)
    return pooled @ cls_w.T + cls_b


def _reference_bf16_inputs(hidden_states, pooler_w, pooler_b, cls_w, cls_b):
    # Same numerics as the kernel's inputs (bf16 x0 / Wp, f32 accumulation).
    x0 = hidden_states[:, 0, :].astype(jnp.bfloat16).astype(jnp.float32)
    wp = pooler_w.astype(jnp.bfloat16).astype(jnp.float32)
    pooled = jnp.tanh(x0 @ wp.T + pooler_b)
    return pooled @ cls_w.T + cls_b


if __name__ == "__main__":
    B, S, H = 2, 8, 32

    key = jax.random.PRNGKey(0)
    k_hid, k_pw, k_pb, k_cw, k_cb = jax.random.split(key, 5)

    hidden_states = jax.random.normal(k_hid, (B, S, H), dtype=jnp.float32)
    # Deterministic synthetic parameters (shapes match the PyTorch module).
    pooler_w = jax.random.normal(k_pw, (H, H), dtype=jnp.float32) * (1.0 / H**0.5)
    pooler_b = jax.random.normal(k_pb, (H,), dtype=jnp.float32) * 0.02
    cls_w = jax.random.normal(k_cw, (2, H), dtype=jnp.float32) * (1.0 / H**0.5)
    cls_b = jax.random.normal(k_cb, (2,), dtype=jnp.float32) * 0.02

    out = bert_is_matched_predictor(hidden_states, pooler_w, pooler_b, cls_w, cls_b)
    logits = jax.block_until_ready(out["ITM_LOGITS"])
    assert logits.shape == (B, 2)

    # Tight check against a reference that uses the same bf16-quantized inputs.
    ref_q = _reference_bf16_inputs(hidden_states, pooler_w, pooler_b, cls_w, cls_b)
    assert jnp.allclose(logits, ref_q, atol=2e-3, rtol=2e-3)

    # Loose sanity check against the pure-f32 module reference.
    ref = _reference_f32(hidden_states, pooler_w, pooler_b, cls_w, cls_b)
    assert jnp.allclose(logits, ref, atol=1e-1, rtol=1e-1)

    print("KERNEL_OK")
</pallas_src>

<mosaic_0001>
module attributes {stable_mosaic.version = 11 : i64} {
  func.func @_itm_kernel(%arg0: i32, %arg1: memref<2x32xbf16, #tpu.memory_space<vmem>>, %arg2: memref<32x32xbf16, #tpu.memory_space<vmem>>, %arg3: memref<1x32xf32, #tpu.memory_space<vmem>>, %arg4: memref<2x32xf32, #tpu.memory_space<vmem>>, %arg5: memref<1x2xf32, #tpu.memory_space<vmem>>, %arg6: memref<2x2xf32, #tpu.memory_space<vmem>>) attributes {dimension_semantics = [#tpu.dimension_semantics<parallel>], iteration_bounds = array<i64: 1>, scalar_prefetch = 0 : i64, scratch_operands = 0 : i64, tpu.core_type = #tpu.core_type<tc>, window_params = [{transform_indices = @transform_0, window_bounds = array<i64: 2, 32>}, {pipeline_mode = #tpu.pipeline_mode<synchronous>, transform_indices = @transform_1, window_bounds = array<i64: 32, 32>}, {pipeline_mode = #tpu.pipeline_mode<synchronous>, transform_indices = @transform_2, window_bounds = array<i64: 1, 32>}, {pipeline_mode = #tpu.pipeline_mode<synchronous>, transform_indices = @transform_3, window_bounds = array<i64: 2, 32>}, {pipeline_mode = #tpu.pipeline_mode<synchronous>, transform_indices = @transform_4, window_bounds = array<i64: 1, 2>}, {transform_indices = @transform_5, window_bounds = array<i64: 2, 2>}]} {
    %c0 = arith.constant 0 : index
    %c0_0 = arith.constant 0 : index
    %0 = vector.load %arg1[%c0, %c0_0] : memref<2x32xbf16, #tpu.memory_space<vmem>>, vector<2x32xbf16>
    %c0_1 = arith.constant 0 : index
    %c0_2 = arith.constant 0 : index
    %1 = vector.load %arg2[%c0_1, %c0_2] : memref<32x32xbf16, #tpu.memory_space<vmem>>, vector<32x32xbf16>
    %cst = arith.constant dense<0.000000e+00> : vector<2x32xf32>
    %2 = tpu.matmul %0, %1, %cst {dimension_numbers = #tpu.dot_dimension_numbers<[1], [1], [0], [0], [0, 0, 1, 0], [], []>} : vector<2x32xbf16>, vector<32x32xbf16>, vector<2x32xf32> -> vector<2x32xf32>
    %c0_3 = arith.constant 0 : index
    %c0_4 = arith.constant 0 : index
    %3 = vector.load %arg3[%c0_3, %c0_4] : memref<1x32xf32, #tpu.memory_space<vmem>>, vector<1x32xf32>
    %4 = vector.broadcast %3 : vector<1x32xf32> to vector<2x32xf32>
    %5 = arith.addf %2, %4 : vector<2x32xf32>
    %6 = math.tanh %5 : vector<2x32xf32>
    %c0_5 = arith.constant 0 : index
    %c0_6 = arith.constant 0 : index
    %7 = vector.load %arg4[%c0_5, %c0_6] : memref<2x32xf32, #tpu.memory_space<vmem>>, vector<2x32xf32>
    %cst_7 = arith.constant dense<0.000000e+00> : vector<2x2xf32>
    %8 = tpu.matmul %6, %7, %cst_7 {dimension_numbers = #tpu.dot_dimension_numbers<[1], [1], [0], [0], [0, 0, 1, 0], [], []>} : vector<2x32xf32>, vector<2x32xf32>, vector<2x2xf32> -> vector<2x2xf32>
    %c0_8 = arith.constant 0 : index
    %c0_9 = arith.constant 0 : index
    %9 = vector.load %arg5[%c0_8, %c0_9] : memref<1x2xf32, #tpu.memory_space<vmem>>, vector<1x2xf32>
    %10 = vector.broadcast %9 : vector<1x2xf32> to vector<2x2xf32>
    %11 = arith.addf %8, %10 : vector<2x2xf32>
    %c0_10 = arith.constant 0 : index
    %c0_11 = arith.constant 0 : index
    %12 = vector.load %arg6[%c0_10, %c0_11] : memref<2x2xf32, #tpu.memory_space<vmem>>, vector<2x2xf32>
    tpu.vector_store %arg6[%c0_10, %c0_11], %11 {strides = array<i32>} : memref<2x2xf32, #tpu.memory_space<vmem>>, vector<2x2xf32>,
    return
  }
  func.func @transform_0(%arg0: i32) -> (i32, i32) {
    %c0_i32 = arith.constant 0 : i32
    %c0_i32_0 = arith.constant 0 : i32
    return %arg0, %c0_i32 : i32, i32
  }
  func.func @transform_1(%arg0: i32) -> (i32, i32) {
    %c0_i32 = arith.constant 0 : i32
    %c0_i32_0 = arith.constant 0 : i32
    %c0_i32_1 = arith.constant 0 : i32
    return %c0_i32, %c0_i32_0 : i32, i32
  }
  func.func @transform_2(%arg0: i32) -> (i32, i32) {
    %c0_i32 = arith.constant 0 : i32
    %c0_i32_0 = arith.constant 0 : i32
    %c0_i32_1 = arith.constant 0 : i32
    return %c0_i32, %c0_i32_0 : i32, i32
  }
  func.func @transform_3(%arg0: i32) -> (i32, i32) {
    %c0_i32 = arith.constant 0 : i32
    %c0_i32_0 = arith.constant 0 : i32
    %c0_i32_1 = arith.constant 0 : i32
    return %c0_i32, %c0_i32_0 : i32, i32
  }
  func.func @transform_4(%arg0: i32) -> (i32, i32) {
    %c0_i32 = arith.constant 0 : i32
    %c0_i32_0 = arith.constant 0 : i32
    %c0_i32_1 = arith.constant 0 : i32
    return %c0_i32, %c0_i32_0 : i32, i32
  }
  func.func @transform_5(%arg0: i32) -> (i32, i32) {
    %c0_i32 = arith.constant 0 : i32
    %c0_i32_0 = arith.constant 0 : i32
    return %arg0, %c0_i32 : i32, i32
  }
}

</mosaic_0001>

<bundles_post_ra>
// kernel: tpu_custom_call.1
= control target key start
LH: loop header
LB: loop body
LE: loop exit
PB: predicated region body
PF: predicated region fallthrough
CT: control target
= control target key end

     0   :  { %10 = vsyncpa [#allocation3], 0  ;;  %s425_s0 = inlined_call_operand.hbm [shape: bf16[2,32], index: 0, kind: input, shape index: {}]   ;;  %s426_s1 = inlined_call_operand.hbm [shape: bf16[32,32], index: 1, kind: input, shape index: {}]   ;;  %s427_s2 = inlined_call_operand.vmem [shape: f32[1,32], index: 2, kind: input, shape index: {}]   ;;  %s428_s3 = inlined_call_operand.vmem [shape: f32[2,32], index: 3, kind: input, shape index: {}]   ;;  %s429_s4 = inlined_call_operand.vmem [shape: f32[1,2], index: 4, kind: input, shape index: {}]   ;;  %s430_s5 = inlined_call_operand.hbm [shape: f32[2,2], index: 5, kind: output, shape index: {}]  }
   0x1   :  { %11 = vsyncpa [#allocation6], 0 }
   0x2   :  { %12 = vsyncpa [#allocation4], 0  ;;  %s331_s18 = smov [#allocation2]   ;;  %s332_s20 = smov [#allocation5]  }
   0x3   :  { %s19_s19 = sshll.u32 %s331_s18, 4  ;;  %s28_s21 = sshll.u32 %s332_s20, 4  ;;  %s20_s19 = int_to_ptr.vmem [resolvable:$true] %s19_s19  ;;  %s368_s21 = int_to_ptr.vmem [resolvable:$true] %s28_s21 }
   0x4   :  { %s259_s24 = scalar_lea.hbm %s425_s0, 16 }
   0x5   :  { %p260_p0 = scmp.ne.s32.totalorder %s425_s0, %s259_s24  ;;  %p263_p1 = scmp.lt.u32.totalorder %s259_s24, %s425_s0 }
   0x7   :  { %p265_p2 = pnand %p263_p1, %p260_p0 }
   0x9   :  { %268 = shalt.err (!%p265_p2)
}
   0xa   :  { %s269_s29 = scalar_lea.vmem %s20_s19, 16  ;;  %s273_s30 = scalar_lea.vmem %s20_s19, 32 }
   0xb   :  { %p270_p3 = scmp.ne.s32.totalorder %s20_s19, %s269_s29  ;;  %p274_p4 = scmp.lt.s32.totalorder %s20_s19, %s20_s19 }
   0xc   :  { %p275_p5 = scmp.lt.s32.totalorder %s273_s30, %s269_s29 }
   0xe   :  { %p276_p6 = por %p275_p5, %p274_p4 }
  0x10   :  { %p277_p7 = pnand %p276_p6, %p270_p3 }
  0x12   :  { %280 = shalt.err (!%p277_p7)
}
  0x13   :  { %22 = dma.hbm_to_vmem [thread:$0]  %s425_s0, 16, %s20_s19, [#allocation3]  }
  0x14   :  { %s281_s10 = scalar_lea.hbm %s426_s1, 256 }
  0x15   :  { %p282_p8 = scmp.ne.s32.totalorder %s426_s1, %s281_s10  ;;  %p285_p9 = scmp.lt.u32.totalorder %s281_s10, %s426_s1 }
  0x17   :  { %p287_p10 = pnand %p285_p9, %p282_p8 }
  0x19   :  { %290 = shalt.err (!%p287_p10)
}
  0x1a   :  { %s291_s15 = scalar_lea.vmem %s368_s21, 256  ;;  %p296_p12 = scmp.lt.s32.totalorder %s368_s21, %s368_s21 }
  0x1b   :  { %p292_p11 = scmp.ne.s32.totalorder %s368_s21, %s291_s15  ;;  %p297_p13 = scmp.lt.s32.totalorder %s291_s15, %s291_s15 }
  0x1d   :  { %p298_p0 = por %p297_p13, %p296_p12 }
  0x1f   :  { %p299_p1 = pnand %p298_p0, %p292_p11 }
  0x21   :  { %302 = shalt.err (!%p299_p1)
}
  0x22   :  { %s333_s0 = smov 64   ;;  %s334_s16 = smov 4  }
  0x23   :  { %34 = dma.hbm_to_vmem [thread:$0]  %s426_s1, 256, %s368_s21, [#allocation6], %s333_s0, %s333_s0, %s334_s16  }
  0x24   :  { %325 = dma.done.wait [#allocation3], 16  }
  0x25   :  { %326 = vsyncadd [#allocation3], 4294967280 }
  0x26   :  { %327 = dma.done.wait [#allocation6], 256  }
  0x27   :  { %328 = vsyncadd [#allocation6], 4294967040  ;;  %v335_v0 = vmov 0.0   ;;  %vm336_vm0 = vmmov 0   ;;  %vm70_vm1 = vcmask 261120   ;;  %v255_v1 = vld [vmem:[#allocation5] sm:$0xff]  }
  0x28   :  { %235 = vmatprep.subr.bf16.mxu0 %v335_v0  ;;  %239 = vmatprep.mubr.msk.bf16.mxu0 %vm336_vm0, %v335_v0  ;;  %v75_v2 = vsel %vm70_vm1, %v255_v1, 0  ;;  %v256_v3 = vld [vmem:[#allocation5 + $0x8] sm:$0xff]   ;;  %v48_v5 = vld [vmem:[#allocation2] sm:$0x1]  ;;  %v121_v6 = vld [vmem:[%s428_s3] sm:$0x3] }
  0x29   :  { %243 = vmatprep.subr.mxu1 %v335_v0  ;;  %245 = vmatprep.mubr.msk.f32.mxu1 %vm336_vm0, %v335_v0  ;;  %v78_v4 = vsel %vm70_vm1, %v256_v3, 0  ;;  %v223_v7 = vld [vmem:[%s427_s2] ss:$0 sm:$0xff]  ;;  %s337_s3 = smov [#allocation7]   ;;  %vm205_vm2 = vcmask 9216  }
  0x2a   :  { %236 = vmatpush3.bf16.xpose.msra.mxu0 %v75_v2  ;;  %244 = vmatpush3.xpose.msk.msra.mxu1 %vm70_vm1, %v121_v6  ;;  %v227_v14 = vld [vmem:[%s429_s4] ss:$0 sm:$0xff]  ;;  %s213_s24 = sshll.u32 %s337_s3, 4  ;;  %s214_s24 = int_to_ptr.vmem [resolvable:$true] %s213_s24 }
  0x2b   :  { %237 = vmatprep.subr.bf16.mxu0 %v335_v0  ;;  %s303_s2 = scalar_lea.vmem %s214_s24, 32  ;;  %p308_p3 = scmp.lt.s32.totalorder %s214_s24, %s214_s24 }
  0x2c   :  { %p304_p2 = scmp.ne.s32.totalorder %s214_s24, %s303_s2  ;;  %p309_p4 = scmp.lt.s32.totalorder %s303_s2, %s303_s2 }
  0x2e   :  { %p310_p5 = por %p309_p4, %p308_p3 }
  0x30   :  { %p311_p6 = pnand %p310_p5, %p304_p2 }
  0x32   :  { %238 = vmatpush3.bf16.xpose.msra.mxu0 %v78_v4 }
  0x39   :  { %240 = vmatmul.mubr.msk.bf16.vlgmr.msra.gmra.mrb[0].mxu0 %vm70_vm1, %v48_v5 }
 0x10c   :  { %v114_v8 = vpop.f32.mrb[0].mxu0 }
 0x10d   :  { %v115_v9 = vadd.f32 %v223_v7, %v114_v8  ;;  %v241_v10 = vpop.f32.mrb[1].mxu0 }
 0x10e   :  { %v117_v11 = vpop.f32.mrb[2].mxu0 }
 0x10f   :  { %257 = vtanh.f32 %v115_v9  ;;  %v242_v12 = vpop.f32.mrb[3].mxu0 }
 0x119   :  { %v258_v13 = vpop.eup %257 }
 0x11a   :  { %246 = vmatmul.mubr.msk.f32.vlgmr.msra.gmra.mrb[0].mxu1 %vm70_vm1, %v258_v13 }
 0x1ed   :  { %v201_v15 = vpop.f32.mrb[0].mxu1 }
 0x1ee   :  { %v202_v16 = vadd.f32 %v227_v14, %v201_v15  ;;  %v247_v17 = vpop.f32.mrb[1].mxu1 }
 0x1f0   :  { %206 = vst.msk [vmem:[#allocation7] sm:$0x3] %vm205_vm2, %v202_v16 }
 0x1f1   :  { %314 = shalt.err (!%p311_p6)
}
 0x1f2   :  { %s315_s27 = scalar_lea.hbm %s430_s5, 32 }
 0x1f3   :  { %p316_p7 = scmp.ne.s32.totalorder %s430_s5, %s315_s27  ;;  %p319_p8 = scmp.lt.u32.totalorder %s315_s27, %s430_s5 }
 0x1f5   :  { %p321_p9 = pnand %p319_p8, %p316_p7 }
 0x1f7   :  { %324 = shalt.err (!%p321_p9)
}
 0x1f8   :  { %216 = dma.vmem_to_hbm [thread:$0]  %s214_s24, 32, %s430_s5, [#allocation4]  }
 0x1f9   :  { %329 = dma.done.wait [#allocation4], 32  }
 0x1fa   :  { %330 = vsyncadd [#allocation4], 4294967264 }
 0x1fb   :  { %220 = vsyncpa [#allocation3], 1 }
 0x1fc   :  { %221 = vsyncpa [#allocation6], 1 }
 0x1fd   :  { %222 = vsyncpa [#allocation4], 1 }

</bundles_post_ra>
